<compile_context>
chip_gen: v5e
topology: v5e:2x2
jax: 0.10.0
libtpu: 0.0.40
codegen_flags: <defaults>
</compile_context>

<pallas_src>
import functools

import jax
import jax.numpy as jnp
from jax.experimental import pallas as pl
from jax.experimental.pallas import tpu as pltpu

_LANE = 128            # lane width (last dim)
_SUBLANE = 8           # f32 sublane tile (second-to-last dim)
_MAX_BATCH_TILE = 256  # batch tile size once batch is large


def _round_up(n, m):
    return ((n + m - 1) // m) * m


def _vmem_cap_bytes():
    """Chip-aware VMEM ceiling (leave headroom); falls back to a v7x-safe cap."""
    try:
        cap = int(getattr(pltpu.get_tpu_info(), "vmem_capacity_bytes"))
    except Exception:
        cap = 64 * 1024 * 1024
    return int(cap * 3 // 4)


# ---------------------------------------------------------------------------
# Fused kernel: x -> [Linear -> ReLU]*(n-1) -> Linear, all in one body.
# refs = (x_ref, w1, b1, w2, b2, ..., wn, bn, o_ref)
# ---------------------------------------------------------------------------
def _fused_mlp_kernel(*refs, num_layers):
    x_ref, o_ref = refs[0], refs[-1]
    wb = refs[1:-1]

    h = x_ref[...].astype(jnp.float32)               # activations stay on-chip
    for i in range(num_layers):
        w_ref = wb[2 * i]
        b_ref = wb[2 * i + 1]
        # Cast activations to the weight dtype (bf16 fast path) and accumulate
        # in f32 on the MXU; bias-add / ReLU stay in f32 on the VPU.
        h = jnp.dot(h.astype(w_ref.dtype), w_ref[...],
                    preferred_element_type=jnp.float32)
        h = h + b_ref[...]                           # (1, H) broadcasts over batch
        if i != num_layers - 1:
            h = jnp.maximum(h, 0.0)                  # ReLU on hidden layers only
        # Dropout(p) is identity in inference mode.
    o_ref[...] = h.astype(o_ref.dtype)


def fused_mlp(x_padded, padded_params, *, tm):
    """Single pallas_call running the entire MLP, tiled over batch.

    x_padded: [B_pad, input_dim] with B_pad % tm == 0 and tm % 8 == 0.
    padded_params: list of (W [Din(_pad), Dout_pad], b [1, Dout_pad]).
    """
    num_layers = len(padded_params)
    B, D = x_padded.shape
    O = padded_params[-1][0].shape[1]
    grid = (B // tm,)

    flat_inputs = [x_padded]
    in_specs = [pl.BlockSpec((tm, D), lambda i: (i, 0))]
    for (w, b) in padded_params:
        din, dout = w.shape
        flat_inputs.append(w)
        in_specs.append(pl.BlockSpec((din, dout), lambda i: (0, 0)))   # resident
        flat_inputs.append(b)
        in_specs.append(pl.BlockSpec((1, dout), lambda i: (0, 0)))     # resident

    # Cost estimate (advisory) + VMEM sizing from actual block sizes.
    flops = 0
    bytes_accessed = x_padded.size * x_padded.dtype.itemsize
    bytes_accessed += B * O * x_padded.dtype.itemsize
    weight_bytes = 0
    max_act = D
    for (w, b) in padded_params:
        flops += 2 * B * w.shape[0] * w.shape[1]
        weight_bytes += w.size * w.dtype.itemsize + b.size * b.dtype.itemsize
        max_act = max(max_act, w.shape[1])
    bytes_accessed += weight_bytes

    need = weight_bytes * 2                                 # weights (+ buffering slack)
    need += 2 * tm * D * x_padded.dtype.itemsize            # double-buffered x tile
    need += 2 * tm * O * x_padded.dtype.itemsize            # double-buffered out tile
    need += 4 * tm * max_act * 4                            # f32 intermediate activations
    vmem_limit = int(min(max(2 * need + (2 << 20), 16 << 20), _vmem_cap_bytes()))

    kernel = functools.partial(_fused_mlp_kernel, num_layers=num_layers)
    return pl.pallas_call(
        kernel,
        out_shape=jax.ShapeDtypeStruct((B, O), x_padded.dtype),
        grid=grid,
        in_specs=in_specs,
        out_specs=pl.BlockSpec((tm, O), lambda i: (i, 0)),
        compiler_params=pltpu.CompilerParams(
            dimension_semantics=("parallel",),
            vmem_limit_bytes=vmem_limit),
        cost_estimate=pl.CostEstimate(
            flops=int(flops), transcendentals=0, bytes_accessed=int(bytes_accessed)),
    )(*flat_inputs)


# ---------------------------------------------------------------------------
# Parameter init (PyTorch nn.Linear default-like) + one-time padding / cast.
# ---------------------------------------------------------------------------
def init_mlp_params(key, input_dim, hidden_dims, output_dim):
    """Unpadded f32 params. W stored as [in, out] (transpose of PyTorch [out, in])."""
    dims = [input_dim] + list(hidden_dims) + [output_dim]
    params = []
    for i in range(len(dims) - 1):
        d_in, d_out = dims[i], dims[i + 1]
        key, kw, kb = jax.random.split(key, 3)
        bound = 1.0 / jnp.sqrt(jnp.float32(d_in))
        w = jax.random.uniform(kw, (d_in, d_out), jnp.float32, -bound, bound)
        b = jax.random.uniform(kb, (d_out,), jnp.float32, -bound, bound)
        params.append((w, b))
    return params


def pad_params(params, param_dtype=jnp.bfloat16):
    """One-time: lane-pad output (N) dims to 128, cast weights to param_dtype.

    Layer 0 keeps its true input_dim as K (no 128 pad); deeper layers' K equals
    the previous layer's padded N (the extra rows are zeros -> exact math).
    Biases stay f32 and are added to the f32 accumulator.
    """
    padded = []
    prev_out_pad = None
    for li, (w, b) in enumerate(params):
        d_in, d_out = w.shape
        d_in_p = d_in if li == 0 else prev_out_pad
        d_out_p = _round_up(d_out, _LANE)
        wp = jnp.zeros((d_in_p, d_out_p), param_dtype)
        wp = wp.at[:d_in, :d_out].set(w.astype(param_dtype))
        bp = jnp.zeros((1, d_out_p), jnp.float32).at[0, :d_out].set(b)
        padded.append((wp, bp))
        prev_out_pad = d_out_p
    return padded


# ---------------------------------------------------------------------------
# Jitted forward: (pad batch only if needed) -> fused kernel -> slice logits.
# ---------------------------------------------------------------------------
def _mlp_forward(padded_params, x, *, output_dim):
    B, D = x.shape
    assert D == padded_params[0][0].shape[0], "input_dim mismatch with params"
    B8 = _round_up(max(B, _SUBLANE), _SUBLANE)
    tm = B8 if B8 <= _MAX_BATCH_TILE else _MAX_BATCH_TILE
    B_pad = _round_up(B8, tm)
    if B_pad != B:
        x_in = jnp.zeros((B_pad, D), x.dtype).at[:B, :].set(x)
    else:
        x_in = x                                   # no per-call padding copy
    out = fused_mlp(x_in, padded_params, tm=tm)
    return out[:B, :output_dim]


mlp_forward = jax.jit(_mlp_forward, static_argnames=("output_dim",))


def _reference_forward(params, x):
    ref = x
    for i, (w, b) in enumerate(params):
        ref = ref @ w + b
        if i != len(params) - 1:
            ref = jnp.maximum(ref, 0.0)
    return ref


if __name__ == "__main__":
    # Small shapes consistent with the module's forward: x is [batch, input_dim].
    batch = 8
    input_dim = 32
    hidden_dims = [64, 32]
    output_dim = 3

    key = jax.random.PRNGKey(0)
    key_params, key_x, key_x2 = jax.random.split(key, 3)

    params = init_mlp_params(key_params, input_dim, hidden_dims, output_dim)
    x = jax.random.normal(key_x, (batch, input_dim), dtype=jnp.float32)

    # --- f32-weight path: tight numerical check ---------------------------
    p_f32 = pad_params(params, jnp.float32)
    logits = mlp_forward(p_f32, x, output_dim=output_dim)
    jax.block_until_ready(logits)
    ref = _reference_forward(params, x)
    assert logits.shape == (batch, output_dim)
    assert jnp.allclose(logits, ref, atol=1e-5, rtol=1e-5)

    # --- bf16-weight fast path (default), ragged batch exercises padding ---
    batch2 = 10
    x2 = jax.random.normal(key_x2, (batch2, input_dim), dtype=jnp.float32)
    p_bf16 = pad_params(params, jnp.bfloat16)
    logits2 = mlp_forward(p_bf16, x2, output_dim=output_dim)
    jax.block_until_ready(logits2)
    ref2 = _reference_forward(params, x2)
    assert logits2.shape == (batch2, output_dim)
    assert jnp.allclose(logits2, ref2, atol=3e-2, rtol=3e-2)

    print("KERNEL_OK")
</pallas_src>

<mosaic_0001>
module attributes {stable_mosaic.version = 11 : i64} {
  func.func @_fused_mlp_kernel(%arg0: i32, %arg1: memref<8x32xf32, #tpu.memory_space<vmem>>, %arg2: memref<32x128xf32, #tpu.memory_space<vmem>>, %arg3: memref<1x128xf32, #tpu.memory_space<vmem>>, %arg4: memref<128x128xf32, #tpu.memory_space<vmem>>, %arg5: memref<1x128xf32, #tpu.memory_space<vmem>>, %arg6: memref<128x128xf32, #tpu.memory_space<vmem>>, %arg7: memref<1x128xf32, #tpu.memory_space<vmem>>, %arg8: memref<8x128xf32, #tpu.memory_space<vmem>>) attributes {dimension_semantics = [#tpu.dimension_semantics<parallel>], iteration_bounds = array<i64: 1>, scalar_prefetch = 0 : i64, scratch_operands = 0 : i64, tpu.core_type = #tpu.core_type<tc>, window_params = [{transform_indices = @transform_0, window_bounds = array<i64: 8, 32>}, {pipeline_mode = #tpu.pipeline_mode<synchronous>, transform_indices = @transform_1, window_bounds = array<i64: 32, 128>}, {pipeline_mode = #tpu.pipeline_mode<synchronous>, transform_indices = @transform_2, window_bounds = array<i64: 1, 128>}, {pipeline_mode = #tpu.pipeline_mode<synchronous>, transform_indices = @transform_3, window_bounds = array<i64: 128, 128>}, {pipeline_mode = #tpu.pipeline_mode<synchronous>, transform_indices = @transform_4, window_bounds = array<i64: 1, 128>}, {pipeline_mode = #tpu.pipeline_mode<synchronous>, transform_indices = @transform_5, window_bounds = array<i64: 128, 128>}, {pipeline_mode = #tpu.pipeline_mode<synchronous>, transform_indices = @transform_6, window_bounds = array<i64: 1, 128>}, {transform_indices = @transform_7, window_bounds = array<i64: 8, 128>}]} {
    %c0 = arith.constant 0 : index
    %c0_0 = arith.constant 0 : index
    %0 = vector.load %arg1[%c0, %c0_0] : memref<8x32xf32, #tpu.memory_space<vmem>>, vector<8x32xf32>
    %c0_1 = arith.constant 0 : index
    %c0_2 = arith.constant 0 : index
    %1 = vector.load %arg2[%c0_1, %c0_2] : memref<32x128xf32, #tpu.memory_space<vmem>>, vector<32x128xf32>
    %cst = arith.constant dense<0.000000e+00> : vector<8x128xf32>
    %2 = tpu.matmul %0, %1, %cst {dimension_numbers = #tpu.dot_dimension_numbers<[1], [0], [0], [1], [0, 0, 1, 1], [], []>} : vector<8x32xf32>, vector<32x128xf32>, vector<8x128xf32> -> vector<8x128xf32>
    %c0_3 = arith.constant 0 : index
    %c0_4 = arith.constant 0 : index
    %3 = vector.load %arg3[%c0_3, %c0_4] : memref<1x128xf32, #tpu.memory_space<vmem>>, vector<1x128xf32>
    %4 = vector.broadcast %3 : vector<1x128xf32> to vector<8x128xf32>
    %5 = arith.addf %2, %4 : vector<8x128xf32>
    %cst_5 = arith.constant 0.000000e+00 : f32
    %6 = vector.broadcast %cst_5 : f32 to vector<8x128xf32>
    %7 = arith.maximumf %5, %6 : vector<8x128xf32>
    %c0_6 = arith.constant 0 : index
    %c0_7 = arith.constant 0 : index
    %8 = vector.load %arg4[%c0_6, %c0_7] : memref<128x128xf32, #tpu.memory_space<vmem>>, vector<128x128xf32>
    %cst_8 = arith.constant dense<0.000000e+00> : vector<8x128xf32>
    %9 = tpu.matmul %7, %8, %cst_8 {dimension_numbers = #tpu.dot_dimension_numbers<[1], [0], [0], [1], [0, 0, 1, 1], [], []>} : vector<8x128xf32>, vector<128x128xf32>, vector<8x128xf32> -> vector<8x128xf32>
    %c0_9 = arith.constant 0 : index
    %c0_10 = arith.constant 0 : index
    %10 = vector.load %arg5[%c0_9, %c0_10] : memref<1x128xf32, #tpu.memory_space<vmem>>, vector<1x128xf32>
    %11 = vector.broadcast %10 : vector<1x128xf32> to vector<8x128xf32>
    %12 = arith.addf %9, %11 : vector<8x128xf32>
    %cst_11 = arith.constant 0.000000e+00 : f32
    %13 = vector.broadcast %cst_11 : f32 to vector<8x128xf32>
    %14 = arith.maximumf %12, %13 : vector<8x128xf32>
    %c0_12 = arith.constant 0 : index
    %c0_13 = arith.constant 0 : index
    %15 = vector.load %arg6[%c0_12, %c0_13] : memref<128x128xf32, #tpu.memory_space<vmem>>, vector<128x128xf32>
    %cst_14 = arith.constant dense<0.000000e+00> : vector<8x128xf32>
    %16 = tpu.matmul %14, %15, %cst_14 {dimension_numbers = #tpu.dot_dimension_numbers<[1], [0], [0], [1], [0, 0, 1, 1], [], []>} : vector<8x128xf32>, vector<128x128xf32>, vector<8x128xf32> -> vector<8x128xf32>
    %c0_15 = arith.constant 0 : index
    %c0_16 = arith.constant 0 : index
    %17 = vector.load %arg7[%c0_15, %c0_16] : memref<1x128xf32, #tpu.memory_space<vmem>>, vector<1x128xf32>
    %18 = vector.broadcast %17 : vector<1x128xf32> to vector<8x128xf32>
    %19 = arith.addf %16, %18 : vector<8x128xf32>
    %c0_17 = arith.constant 0 : index
    %c0_18 = arith.constant 0 : index
    %20 = vector.load %arg8[%c0_17, %c0_18] : memref<8x128xf32, #tpu.memory_space<vmem>>, vector<8x128xf32>
    tpu.vector_store %arg8[%c0_17, %c0_18], %19 {strides = array<i32>} : memref<8x128xf32, #tpu.memory_space<vmem>>, vector<8x128xf32>,
    return
  }
  func.func @transform_0(%arg0: i32) -> (i32, i32) {
    %c0_i32 = arith.constant 0 : i32
    %c0_i32_0 = arith.constant 0 : i32
    return %arg0, %c0_i32 : i32, i32
  }
  func.func @transform_1(%arg0: i32) -> (i32, i32) {
    %c0_i32 = arith.constant 0 : i32
    %c0_i32_0 = arith.constant 0 : i32
    %c0_i32_1 = arith.constant 0 : i32
    return %c0_i32, %c0_i32_0 : i32, i32
  }
  func.func @transform_2(%arg0: i32) -> (i32, i32) {
    %c0_i32 = arith.constant 0 : i32
    %c0_i32_0 = arith.constant 0 : i32
    %c0_i32_1 = arith.constant 0 : i32
    return %c0_i32, %c0_i32_0 : i32, i32
  }
  func.func @transform_3(%arg0: i32) -> (i32, i32) {
    %c0_i32 = arith.constant 0 : i32
    %c0_i32_0 = arith.constant 0 : i32
    %c0_i32_1 = arith.constant 0 : i32
    return %c0_i32, %c0_i32_0 : i32, i32
  }
  func.func @transform_4(%arg0: i32) -> (i32, i32) {
    %c0_i32 = arith.constant 0 : i32
    %c0_i32_0 = arith.constant 0 : i32
    %c0_i32_1 = arith.constant 0 : i32
    return %c0_i32, %c0_i32_0 : i32, i32
  }
  func.func @transform_5(%arg0: i32) -> (i32, i32) {
    %c0_i32 = arith.constant 0 : i32
    %c0_i32_0 = arith.constant 0 : i32
    %c0_i32_1 = arith.constant 0 : i32
    return %c0_i32, %c0_i32_0 : i32, i32
  }
  func.func @transform_6(%arg0: i32) -> (i32, i32) {
    %c0_i32 = arith.constant 0 : i32
    %c0_i32_0 = arith.constant 0 : i32
    %c0_i32_1 = arith.constant 0 : i32
    return %c0_i32, %c0_i32_0 : i32, i32
  }
  func.func @transform_7(%arg0: i32) -> (i32, i32) {
    %c0_i32 = arith.constant 0 : i32
    %c0_i32_0 = arith.constant 0 : i32
    return %arg0, %c0_i32 : i32, i32
  }
}

</mosaic_0001>

<bundles_post_ra>
// kernel: _mlp_forward.1
= control target key start
LH: loop header
LB: loop body
LE: loop exit
PB: predicated region body
PF: predicated region fallthrough
CT: control target
= control target key end

     0   :  { %12 = vsyncpa [#allocation3], 0  ;;  %s431_s0 = inlined_call_operand.hbm [shape: f32[8,32], index: 0, kind: input, shape index: {}]   ;;  %s432_s1 = inlined_call_operand.hbm [shape: f32[32,128], index: 1, kind: input, shape index: {}]   ;;  %s433_s2 = inlined_call_operand.hbm [shape: f32[1,128], index: 2, kind: input, shape index: {}]   ;;  %s434_s3 = inlined_call_operand.hbm [shape: f32[128,128], index: 3, kind: input, shape index: {}]   ;;  %s435_s4 = inlined_call_operand.vmem [shape: f32[1,128], index: 4, kind: input, shape index: {}]   ;;  %s436_s5 = inlined_call_operand.hbm [shape: f32[128,128], index: 5, kind: input, shape index: {}]   ;;  %s437_s6 = inlined_call_operand.vmem [shape: f32[1,128], index: 6, kind: input, shape index: {}]   ;;  %s438_s7 = inlined_call_operand.vmem [shape: f32[8,128], index: 7, kind: output, shape index: {}]  }
   0x1   :  { %13 = vsyncpa [#allocation5], 0  ;;  %s30_s26 = sshll.u32 %s432_s1, 4  ;;  %s31_s26 = int_to_ptr.hbm [resolvable:$true] %s30_s26 }
   0x2   :  { %14 = vsyncpa [#allocation8], 0  ;;  %s360_s27 = smov [#allocation4]   ;;  %s54_s8 = sshll.u32 %s434_s3, 4  ;;  %s55_s8 = int_to_ptr.hbm [resolvable:$true] %s54_s8 }
   0x3   :  { %s32_s28 = sshll.u32 %s360_s27, 4  ;;  %s361_s9 = smov 128   ;;  %s33_s28 = int_to_ptr.vmem [resolvable:$true] %s32_s28 }
   0x4   :  { %s362_s10 = smov 8   ;;  %s363_s11 = smov [#allocation7]  }
   0x5   :  { %38 = dma.hbm_to_vmem [thread:$0]  %s31_s26, 512, %s33_s28, [#allocation5], %s361_s9, %s361_s9, %s362_s10  }
   0x6   :  { %s56_s12 = sshll.u32 %s363_s11, 4  ;;  %s20_s15 = sshll.u32 %s431_s0, 4  ;;  %s57_s12 = int_to_ptr.vmem [resolvable:$true] %s56_s12  ;;  %s21_s15 = int_to_ptr.hbm [resolvable:$true] %s20_s15 }
   0x7   :  { %62 = dma.hbm_to_vmem [thread:$0]  %s55_s8, 2048, %s57_s12, [#allocation8], %s361_s9, %s361_s9, %s362_s10  }
   0x8   :  { %s44_s17 = sshll.u32 %s433_s2, 4  ;;  %s364_s18 = smov [#allocation2]   ;;  %s45_s17 = int_to_ptr.hbm [resolvable:$true] %s44_s17 }
   0x9   :  { %s22_s19 = sshll.u32 %s364_s18, 4  ;;  %s365_s3 = smov [#allocation6]   ;;  %s23_s19 = int_to_ptr.vmem [resolvable:$true] %s22_s19 }
   0xa   :  { %25 = dma.hbm_to_vmem [thread:$0]  %s21_s15, 128, %s23_s19, [#allocation3]  }
   0xb   :  { %s46_s20 = sshll.u32 %s365_s3, 4  ;;  %s69_s23 = sshll.u32 %s436_s5, 4  ;;  %s47_s20 = int_to_ptr.vmem [resolvable:$true] %s46_s20  ;;  %s70_s23 = int_to_ptr.hbm [resolvable:$true] %s69_s23 }
   0xc   :  { %49 = dma.hbm_to_vmem [thread:$0]  %s45_s17, 16, %s47_s20, [#allocation5]  }
   0xd   :  { %s366_s0 = smov [#allocation9]  }
   0xe   :  { %s71_s24 = sshll.u32 %s366_s0, 4  ;;  %s72_s24 = int_to_ptr.vmem [resolvable:$true] %s71_s24 }
   0xf   :  { %77 = dma.hbm_to_vmem [thread:$0]  %s70_s23, 2048, %s72_s24, [#allocation8], %s361_s9, %s361_s9, %s362_s10  }
  0x10   :  { %354 = dma.done.wait [#allocation3], 128  }
  0x11   :  { %355 = vsyncadd [#allocation3], 4294967168 }
  0x12   :  { %356 = dma.done.wait [#allocation5], 528  }
  0x13   :  { %357 = vsyncadd [#allocation5], 4294966768 }
  0x14   :  { %358 = dma.done.wait [#allocation8], 4096  }
  0x15   :  { %359 = vsyncadd [#allocation8], 4294963200  ;;  %v104_v0 = vld [vmem:[#allocation4 + $0x18] sm:$0xff]  ;;  %v103_v1 = vld [vmem:[#allocation4 + $0x10] sm:$0xff]  ;;  %vm109_vm0 = vcmask 261120  }
  0x16   :  { %125 = vmatpush.msra.mxu0 %v104_v0  ;;  %v149_v2 = vld [vmem:[#allocation7 + $0x78] sm:$0xff]  ;;  %v102_v3 = vld [vmem:[#allocation4 + $0x8] sm:$0xff]  ;;  %v148_v4 = vld [vmem:[#allocation7 + $0x70] sm:$0xff] }
  0x17   :  { %154 = vmatpush.msra.mxu1 %v149_v2  ;;  %v147_v5 = vld [vmem:[#allocation7 + $0x68] sm:$0xff]  ;;  %v101_v6 = vld [vmem:[#allocation4] sm:$0xff]  ;;  %v100_v7 = vld [vmem:[#allocation2] sm:$0xff] }
  0x18   :  { %126 = vmatpush.msra.mxu0 %v103_v1  ;;  %v146_v8 = vld [vmem:[#allocation7 + $0x60] sm:$0xff]  ;;  %v145_v9 = vld [vmem:[#allocation7 + $0x58] sm:$0xff]  ;;  %v144_v10 = vld [vmem:[#allocation7 + $0x50] sm:$0xff] }
  0x19   :  { %155 = vmatpush.msra.mxu1 %v148_v4  ;;  %v143_v11 = vld [vmem:[#allocation7 + $0x48] sm:$0xff]  ;;  %v142_v12 = vld [vmem:[#allocation7 + $0x40] sm:$0xff]  ;;  %v141_v13 = vld [vmem:[#allocation7 + $0x38] sm:$0xff] }
  0x1a   :  { %127 = vmatpush.msra.mxu0 %v102_v3  ;;  %v140_v14 = vld [vmem:[#allocation7 + $0x30] sm:$0xff]  ;;  %v139_v15 = vld [vmem:[#allocation7 + $0x28] sm:$0xff]  ;;  %v138_v16 = vld [vmem:[#allocation7 + $0x20] sm:$0xff] }
  0x1b   :  { %156 = vmatpush.msra.mxu1 %v147_v5  ;;  %v137_v17 = vld [vmem:[#allocation7 + $0x18] sm:$0xff]  ;;  %v136_v18 = vld [vmem:[#allocation7 + $0x10] sm:$0xff]  ;;  %v135_v19 = vld [vmem:[#allocation7 + $0x8] sm:$0xff] }
  0x1c   :  { %128 = vmatpush.msra.mxu0 %v101_v6  ;;  %v134_v20 = vld [vmem:[#allocation7] sm:$0xff]  ;;  %v190_v21 = vld [vmem:[#allocation9 + $0x78] sm:$0xff]  ;;  %v189_v22 = vld [vmem:[#allocation9 + $0x70] sm:$0xff] }
  0x1d   :  { %223 = vmatmul.msk.f32.vlgmr.msra.gmra.mxu0 %vm109_vm0, %v100_v7  ;;  %157 = vmatpush.msra.mxu1 %v146_v8  ;;  %v188_v23 = vld [vmem:[#allocation9 + $0x68] sm:$0xff]  ;;  %v187_v24 = vld [vmem:[#allocation9 + $0x60] sm:$0xff]  ;;  %v186_v25 = vld [vmem:[#allocation9 + $0x58] sm:$0xff] }
  0x1e   :  { %195 = vmatpush.msra.mxu2 %v190_v21  ;;  %v185_v26 = vld [vmem:[#allocation9 + $0x50] sm:$0xff]  ;;  %v184_v27 = vld [vmem:[#allocation9 + $0x48] sm:$0xff]  ;;  %v183_v28 = vld [vmem:[#allocation9 + $0x40] sm:$0xff] }
  0x1f   :  { %158 = vmatpush.msra.mxu1 %v145_v9  ;;  %v182_v29 = vld [vmem:[#allocation9 + $0x38] sm:$0xff]  ;;  %v181_v30 = vld [vmem:[#allocation9 + $0x30] sm:$0xff]  ;;  %v180_v31 = vld [vmem:[#allocation9 + $0x28] sm:$0xff] }
  0x20   :  { %196 = vmatpush.msra.mxu2 %v189_v22  ;;  %v179_v32 = vld [vmem:[#allocation9 + $0x20] sm:$0xff]  ;;  %v178_v33 = vld [vmem:[#allocation9 + $0x18] sm:$0xff]  ;;  %v177_v38 = vld [vmem:[#allocation9 + $0x10] sm:$0xff] }
  0x21   :  { %159 = vmatpush.msra.mxu1 %v144_v10  ;;  %v231_v34 = vld [vmem:[#allocation6] ss:$0 sm:$0xff]  ;;  %v176_v39 = vld [vmem:[#allocation9 + $0x8] sm:$0xff]  ;;  %v175_v40 = vld [vmem:[#allocation9] sm:$0xff] }
  0x22   :  { %197 = vmatpush.msra.mxu2 %v188_v23  ;;  %v232_v41 = vld [vmem:[%s435_s4] ss:$0 sm:$0xff] }
  0x23   :  { %160 = vmatpush.msra.mxu1 %v143_v11  ;;  %v233_v45 = vld [vmem:[%s437_s6] ss:$0 sm:$0xff] }
  0x24   :  { %198 = vmatpush.msra.mxu2 %v187_v24 }
  0x25   :  { %161 = vmatpush.msra.mxu1 %v142_v12 }
  0x26   :  { %199 = vmatpush.msra.mxu2 %v186_v25 }
  0x27   :  { %162 = vmatpush.msra.mxu1 %v141_v13 }
  0x28   :  { %200 = vmatpush.msra.mxu2 %v185_v26 }
  0x29   :  { %163 = vmatpush.msra.mxu1 %v140_v14 }
  0x2a   :  { %201 = vmatpush.msra.mxu2 %v184_v27 }
  0x2b   :  { %164 = vmatpush.msra.mxu1 %v139_v15 }
  0x2c   :  { %202 = vmatpush.msra.mxu2 %v183_v28 }
  0x2d   :  { %165 = vmatpush.msra.mxu1 %v138_v16 }
  0x2e   :  { %203 = vmatpush.msra.mxu2 %v182_v29 }
  0x2f   :  { %166 = vmatpush.msra.mxu1 %v137_v17 }
  0x30   :  { %204 = vmatpush.msra.mxu2 %v181_v30 }
  0x31   :  { %167 = vmatpush.msra.mxu1 %v136_v18 }
  0x32   :  { %205 = vmatpush.msra.mxu2 %v180_v31 }
  0x33   :  { %168 = vmatpush.msra.mxu1 %v135_v19 }
  0x34   :  { %206 = vmatpush.msra.mxu2 %v179_v32 }
  0x35   :  { %169 = vmatpush.msra.mxu1 %v134_v20 }
  0x36   :  { %207 = vmatpush.msra.mxu2 %v178_v33 }
  0x38   :  { %208 = vmatpush.msra.mxu2 %v177_v38 }
  0x3a   :  { %209 = vmatpush.msra.mxu2 %v176_v39 }
  0x3c   :  { %210 = vmatpush.msra.mxu2 %v175_v40 }
  0x9a   :  { %v130_v35 = vpop.f32.mrf.mxu0 }
  0x9b   :  { %v131_v36 = vadd.f32 %v231_v34, %v130_v35 }
  0x9d   :  { %v133_v37 = vmax.f32 %v131_v36, 0.0 }
  0x9f   :  { %170 = vmatmul.f32.vlgmr.msra.gmra.mxu1 %v133_v37 }
 0x11c   :  { %v171_v42 = vpop.f32.mrf.mxu1 }
 0x11d   :  { %v172_v43 = vadd.f32 %v232_v41, %v171_v42 }
 0x11f   :  { %v174_v44 = vmax.f32 %v172_v43, 0.0 }
 0x121   :  { %211 = vmatmul.f32.vlgmr.msra.gmra.mxu2 %v174_v44 }
 0x1a4   :  { %v212_v46 = vpop.f32.mrf.mxu2 }
 0x1a5   :  { %v213_v47 = vadd.f32 %v233_v45, %v212_v46 }
 0x1a7   :  { %215 = vst [vmem:[%s438_s7] sm:$0xff] %v213_v47 }
 0x1a8   :  { %220 = vsyncpa [#allocation3], 1 }
 0x1a9   :  { %221 = vsyncpa [#allocation5], 1 }
 0x1aa   :  { %222 = vsyncpa [#allocation8], 1 }

</bundles_post_ra>
